<compile_context>
chip_gen: v6e
topology: v6e:2x2x1
jax: 0.10.0
libtpu: 0.0.40
codegen_flags: <defaults>
</compile_context>

<pallas_src>
import types

import jax
import jax.numpy as jnp
from jax.experimental import pallas as pl
from jax.experimental.pallas import tpu as pltpu


# ----------------------------------------------------------------------------
# Kernel 1: per-chunk class mass partials    target (1, C, T) -> (1, 1, C, 1)
# ----------------------------------------------------------------------------
def class_sum_kernel(tgt_ref, out_ref):
    t = tgt_ref[0].astype(jnp.float32)              # (C, T), channels on sublanes
    s = jnp.sum(t, axis=-1, keepdims=True)          # (C, 1)   lane reduction
    out_ref[...] = s[None, None]                    # (1, 1, C, 1)


# ----------------------------------------------------------------------------
# Kernel 2: logit perturbation + soft-target CE partial sum per chunk
# ----------------------------------------------------------------------------
def blv_loss_kernel(scale_ref, pred_ref, tgt_ref, noise_ref, out_ref):
    # scale_ref: (C, 1) f32, resident across the grid (freq / max(freq), hoisted)
    # pred/tgt/noise refs: (1, C, T);  out_ref: (1, 1, 1, 1) partial loss sum
    scale = scale_ref[...]                                      # (C, 1)
    pred = pred_ref[0].astype(jnp.float32)                      # (C, T)
    v = jnp.clip(noise_ref[0].astype(jnp.float32), -1.0, 1.0)
    adj = pred + jnp.abs(v) * scale                             # broadcast over lanes

    # log-softmax over the channel (sublane) axis
    m = jnp.max(adj, axis=0, keepdims=True)                     # (1, T)
    lse = m + jnp.log(jnp.sum(jnp.exp(adj - m), axis=0, keepdims=True))
    logp = adj - lse

    t = tgt_ref[0].astype(jnp.float32)
    tile_loss = -jnp.sum(t * logp, keepdims=True)               # (1, 1)
    out_ref[...] = tile_loss[None, None]                        # (1, 1, 1, 1)


# ----------------------------------------------------------------------------
# Wrapper
# ----------------------------------------------------------------------------
def _pick_tile(hw, max_tile):
    """Largest multiple-of-128 divisor of hw that is <= max_tile.

    Falls back to the full row when hw is not 128-aligned (a block dim equal to the
    full array dim is always allowed).
    """
    if hw % 128 != 0:
        return hw
    best = 128
    for cand in range(128, min(hw, max_tile) + 1, 128):
        if hw % cand == 0:
            best = cand
    return best


def blv_segmenter_loss(pred_nchw, target_nchw, noise_nchw, *, max_tile=16 * 1024):
    N, C, H, W = pred_nchw.shape
    HW = H * W
    T = _pick_tile(HW, max_tile)
    gHW = HW // T

    # Free reshapes: contiguous dims merge, no transpose / copy / dtype cast.
    pred = pred_nchw.reshape(N, C, HW)
    tgt = target_nchw.reshape(N, C, HW)
    noise = noise_nchw.reshape(N, C, HW)

    grid = (N, gHW)
    blk = pl.BlockSpec((1, C, T), lambda i, j: (i, 0, j))
    par = pltpu.CompilerParams(dimension_semantics=("parallel", "parallel"))

    # --- pass 1: per-chunk class mass partials ---
    csum = pl.pallas_call(
        class_sum_kernel,
        out_shape=jax.ShapeDtypeStruct((N, gHW, C, 1), jnp.float32),
        grid_spec=pltpu.PrefetchScalarGridSpec(
            num_scalar_prefetch=0,
            grid=grid,
            in_specs=[blk],
            out_specs=pl.BlockSpec((1, 1, C, 1), lambda i, j: (i, j, 0, 0)),
        ),
        compiler_params=par,
    )(tgt)

    # Tiny finalize in plain JAX: per-class frequency and its hoisted normalization.
    m_list = jnp.sum(csum, axis=(0, 1)) + 1e-4            # (C, 1)
    freq = jnp.log(m_list)
    scale = (freq / jnp.max(freq)).astype(jnp.float32)    # (C, 1)

    # --- pass 2: perturbed soft-target cross entropy, per-chunk partial sums ---
    partial = pl.pallas_call(
        blv_loss_kernel,
        out_shape=jax.ShapeDtypeStruct((N, gHW, 1, 1), jnp.float32),
        grid_spec=pltpu.PrefetchScalarGridSpec(
            num_scalar_prefetch=0,
            grid=grid,
            in_specs=[
                pl.BlockSpec((C, 1), lambda i, j: (0, 0)),   # scale (resident)
                blk,                                          # pred
                blk,                                          # target
                blk,                                          # noise
            ],
            out_specs=pl.BlockSpec((1, 1, 1, 1), lambda i, j: (i, j, 0, 0)),
        ),
        compiler_params=par,
    )(scale, pred, tgt, noise)

    return jnp.sum(partial) / float(N * HW)


# Pure-JAX reference (mirrors the PyTorch forward exactly), used for a sanity check.
def ref_loss(pred, target, noise):
    m_list = jnp.sum(target, axis=(0, 2, 3)) + 1e-4
    freq = jnp.log(m_list)
    v = jnp.clip(noise, -1.0, 1.0)
    adj = pred + jnp.abs(v) / jnp.max(freq) * freq[None, :, None, None]
    logp = jax.nn.log_softmax(adj, axis=1)
    per_pixel = -jnp.sum(target * logp, axis=1)
    return jnp.mean(per_pixel)


if __name__ == "__main__":
    # "args" for the module: only blv_s (noise std) is used; no learnable params.
    args = types.SimpleNamespace(blv_s=2.0)

    N, C, H, W = 2, 4, 16, 16
    key = jax.random.PRNGKey(0)
    k_pred, k_tgt, k_noise = jax.random.split(key, 3)

    pred = jax.random.normal(k_pred, (N, C, H, W), dtype=jnp.float32)
    # Soft probability targets (sum to 1 over the class axis), as accepted by
    # F.cross_entropy with probability targets.
    target = jax.nn.softmax(
        jax.random.normal(k_tgt, (N, C, H, W), dtype=jnp.float32), axis=1
    )
    # Normal(0, blv_s) sample (deterministic via PRNGKey); clamp/abs happen in-kernel.
    noise = args.blv_s * jax.random.normal(k_noise, (N, C, H, W), dtype=jnp.float32)

    out = blv_segmenter_loss(pred, target, noise)
    out = jax.block_until_ready(out)

    ref = jax.block_until_ready(ref_loss(pred, target, noise))
    assert jnp.allclose(out, ref, rtol=1e-5, atol=1e-5), (out, ref)

    print("KERNEL_OK")
</pallas_src>

<mosaic_0001>
module attributes {stable_mosaic.version = 11 : i64} {
  func.func @class_sum_kernel(%arg0: i32, %arg1: i32, %arg2: memref<1x4x256xf32, #tpu.memory_space<vmem>>, %arg3: memref<1x1x4x1xf32, #tpu.memory_space<vmem>>) attributes {dimension_semantics = [#tpu.dimension_semantics<parallel>, #tpu.dimension_semantics<parallel>], iteration_bounds = array<i64: 2, 1>, scalar_prefetch = 0 : i64, scratch_operands = 0 : i64, tpu.core_type = #tpu.core_type<tc>, window_params = [{transform_indices = @transform_0, window_bounds = array<i64: 1, 4, 256>}, {transform_indices = @transform_1, window_bounds = array<i64: 1, 1, 4, 1>}]} {
    %c0 = arith.constant 0 : index
    %c0_0 = arith.constant 0 : index
    %c0_1 = arith.constant 0 : index
    %0 = vector.load %arg2[%c0, %c0_0, %c0_1] : memref<1x4x256xf32, #tpu.memory_space<vmem>>, vector<1x4x256xf32>
    %1 = vector.shape_cast %0 : vector<1x4x256xf32> to vector<4x256xf32>
    %cst = arith.constant dense<0.000000e+00> : vector<4xf32>
    %2 = vector.multi_reduction <add>, %1, %cst [1] : vector<4x256xf32> to vector<4xf32>
    %3 = vector.shape_cast %2 : vector<4xf32> to vector<4x1xf32>
    %4 = vector.shape_cast %3 : vector<4x1xf32> to vector<1x1x4x1xf32>
    %c0_2 = arith.constant 0 : index
    %c0_3 = arith.constant 0 : index
    %c0_4 = arith.constant 0 : index
    %c0_5 = arith.constant 0 : index
    %5 = vector.load %arg3[%c0_2, %c0_3, %c0_4, %c0_5] : memref<1x1x4x1xf32, #tpu.memory_space<vmem>>, vector<1x1x4x1xf32>
    tpu.vector_store %arg3[%c0_2, %c0_3, %c0_4, %c0_5], %4 {strides = array<i32>} : memref<1x1x4x1xf32, #tpu.memory_space<vmem>>, vector<1x1x4x1xf32>,
    return
  }
  func.func @transform_0(%arg0: i32, %arg1: i32) -> (i32, i32, i32) {
    %c0_i32 = arith.constant 0 : i32
    %c0_i32_0 = arith.constant 0 : i32
    return %arg0, %c0_i32, %arg1 : i32, i32, i32
  }
  func.func @transform_1(%arg0: i32, %arg1: i32) -> (i32, i32, i32, i32) {
    %c0_i32 = arith.constant 0 : i32
    %c0_i32_0 = arith.constant 0 : i32
    %c0_i32_1 = arith.constant 0 : i32
    return %arg0, %arg1, %c0_i32, %c0_i32_0 : i32, i32, i32, i32
  }
}

</mosaic_0001>

<bundles_post_ra>
// kernel: tpu_custom_call.1
= control target key start
LH: loop header
LB: loop body
LE: loop exit
PB: predicated region body
PF: predicated region fallthrough
CT: control target
= control target key end

     0   :  { %6 = vsyncpa [#allocation3], 0  ;;  %s516_s0 = inlined_call_operand.hbm [shape: f32[2,4,256], index: 0, kind: input, shape index: {}]   ;;  %s517_s1 = inlined_call_operand.vmem [shape: f32[2,1,4,1], index: 1, kind: output, shape index: {}]  }
   0x1   :  { %8 = vsyncpa [#allocation3 + $0x1], 0  ;;  %s416_s6 = smov 0   ;;  %s418_s7 = smov 0  }
   0x2   :  { %s420_s8 = smov 0   ;;  %s422_s9 = smov 0  }
   0x3   :  { %s424_s10 = smov 0   ;;  %s426_s11 = smov 0  }
   0x4 LB: > { %s256_s12 = sadd.s32 4294967295, %s403_s11   ;;  %s26_s13 = sadd.s32 1, %s399_s10  ;;  %s403_s11 = sphi %s426_s11, %s14_s11   ;;  %s399_s10 = sphi %s424_s10, %s525_s10   ;;  %s395_s9 = sphi %s422_s9, %s524_s9   ;;  %s391_s8 = sphi %s420_s8, %s523_s8   ;;  %s387_s7 = sphi %s418_s7, %s522_s7   ;;  %s383_s6 = sphi %s416_s6, %s521_s6  }
   0x5   : > { %p28_p0 = scmp.ge.s32.totalorder %s26_s13, 2  ;;  %s35_s14 = sadd.s32 1, %s391_s8 }
   0x6   : > { %p42_p1 = scmp.ne.s32.totalorder %s391_s8, %s387_s7  ;;  %p43_p2 = scmp.eq.s32.totalorder %s403_s11, 0 }
   0x7   : > { %s527_s13 = smov (%p28_p0, %s26_s13), 0  ;;  %p48_p4 = scmp.ne.s32.totalorder %s387_s7, %s383_s6 }
   0x8   : > { %p452_p3 = por %p43_p2, %p42_p1  ;;  %s30_s16 = ssub.s32 %s399_s10, %s527_s13 }
   0x9   : > { %p49_p5 = scmp.eq.s32.totalorder %s256_s12, 0  ;;  %p33_p6 = scmp.eq.s32.totalorder %s30_s16, 0 }
   0xa   : > { %p275_p8 = scmp.lt.s32.totalorder %s403_s11, 2  ;;  %s100_s19 = sand.u32 1, %s391_s8  }
   0xb   : > { %p459_p7 = por %p49_p5, %p48_p4  ;;  %s268_s20 = sshll.u32 %s399_s10, 7 }
   0xc   : > { %s465_s18 = scalar_select %p33_p6, %s391_s8, %s35_s14  }
   0xd   : > { %s260_s21 = sshll.u32 %s100_s19, 3  ;;  %s112_s24 = scalar_lea.hbm %s516_s0, %s268_s20 }
   0xe   : > { %s104_s25 = scalar_lea.vmem [#allocation2], %s260_s21  ;;  %p474_p9 = pnand %p275_p8, %p452_p3 }
   0xf   : > { %s114_s26 = sshll.u32 %s104_s25, 4  ;;  %p263_p10 = scmp.ge.s32.totalorder %s403_s11, 1  ;;  %s115_s26 = int_to_ptr.vmem [resolvable:$true] %s114_s26 }
  0x10   : > { %p119_p11 = scmp.lt.s32.totalorder %s403_s11, 3  ;;  %s101_s28 = scalar_lea.sflag [#allocation3], %s100_s19 }
  0x11   : > { %p327_p12 = pneg %p474_p9  ;;  %s338_s29 = scalar_lea.vmem %s115_s26, 128 }
  0x12   : > { %p339_p13 = scmp.ne.s32.totalorder %s115_s26, %s338_s29  ;;  %s405_s30 = smov [#allocation2]  }
  0x13   : > { %s343_s2 = sshll.u32 %s405_s30, 4  ;;  %s344_s2 = int_to_ptr.vmem [resolvable:$false] %s343_s2 }
  0x14   : > { %p341_p0 = pnand %p339_p13, %p327_p12  ;;  %s345_s3 = scalar_lea.vmem %s344_s2, 256 }
  0x15   : > { %p346_p2 = scmp.lt.s32.totalorder %s115_s26, %s344_s2  ;;  %p347_p3 = scmp.lt.s32.totalorder %s345_s3, %s338_s29 }
  0x16   : > { %p342_p1 = pneg %p341_p0 }
  0x17   : > { %p348_p4 = por %p347_p3, %p346_p2 }
  0x19   : > { %p349_p5 = pnand %p348_p4, %p342_p1 }
  0x1b   : > { %352 = shalt.err (!%p349_p5)
}
  0x1c   : > { %274 = dma.hbm_to_vmem [thread:$0]  (!%p474_p9), %s112_s24, 128, %s115_s26, %s101_s28  }
  0x1d   : > { %p120_p6 = pnand %p263_p10, %p119_p11 }
  0x1e   : > { %s125_s4 = sand.u32 (!%p120_p6), 1, %s387_s7  }
  0x1f   : > { %123 = sbr.rel (%p120_p6) target bundleno = 182 (0xb6), region = 24  ;;  %s264_s5 = sshll.u32 (!%p120_p6), %s125_s4, 3 }
  0x20   : > { %s126_s6 = scalar_lea.sflag (!%p120_p6), [#allocation3], %s125_s4  ;;  %s129_s12 = scalar_lea.vmem (!%p120_p6), [#allocation2], %s264_s5 }
  0x24   : > { %378 = dma.done.wait (%p459_p7), %s126_s6, 128  }
  0x25   : > { %380 = vsyncadd (%p459_p7), %s126_s6, 4294967168  ;;  %vm162_vm0 = vcmask 1043456   ;;  %v158_v0 = vld [vmem:[%s129_s12] sm:$0xff]  ;;  %p151_p8 = scmp.lt.s32.totalorder %s395_s9, 1  ;;  %vm168_vm1 = vcmask 3072  }
  0x26   : > { %v160_v1 = vcombine.high %v158_v0, %v158_v0  ;;  %v163_v2 = vsel %vm162_vm0, %v158_v0, 0.0 }
  0x27   : > { %s529_s9 = smov (!%p151_p8, %s395_s9), 1 }
  0x28   : > { %v164_v3 = vsel %vm162_vm0, %v160_v1, 0.0  ;;  %s265_s14 = sshll.u32 %s529_s9, 2 }
  0x29   : > { %v165_v4 = vadd.f32 %v164_v3, %v163_v2  ;;  %s157_s19 = scalar_lea.vmem %s517_s1, %s265_s14 }
  0x2b   : > { %166 = vadd.xlane.f32.xlu0 %v165_v4 }
  0xb4   : > { %v167_v5 = vpop.xlane.xlu0 %166 }
  0xb5   : > { %169 = vst.msk [vmem:[%s157_s19] sm:$0xf] %vm168_vm1, %v167_v5 }
  0xb6 PF: > { %s14_s11 = sadd.s32 1, %s403_s11   ;;  %s521_s6 = smov %s387_s7 }
  0xb7   : > { %p11_p7 = scmp.ge.s32.totalorder %s14_s11, 4   ;;  %s522_s7 = smov %s391_s8 }
  0xb8   : > { %s523_s8 = smov %s465_s18  ;;  %s524_s9 = smov %s399_s10 }
  0xb9   : > { %s525_s10 = smov %s527_s13  ;;  %13 = sbr.rel (!%p11_p7) target bundleno = 4 (0x4), region = 64 }
  0xbe   :  { %195 = vsyncpa [#allocation3], 1 }
  0xbf   :  { %197 = vsyncpa [#allocation3 + $0x1], 1 }

</bundles_post_ra>
